<compile_context>
chip_gen: v5e
topology: v5e:2x2
jax: 0.10.0
libtpu: 0.0.40
codegen_flags: <defaults>
</compile_context>

<pallas_src>
import math

import jax
import jax.numpy as jnp
from jax.experimental import pallas as pl
from jax.experimental.pallas import tpu as pltpu


# ~4 MiB per input block per stream: 3 streams x 2 pipeline buffers = 24 MiB,
# under the 32 MiB scoped VMEM limit we request (safe on v5e/v6e/v7x), and big
# enough that the ~0.35 us per-step overhead is small even at v7x HBM speeds.
_TARGET_BLOCK_BYTES = 4 * 1024 * 1024
# Below this total size, kernel launch + reshape overhead dominates; XLA's fused
# elementwise already hits the HBM roofline, so use it instead.
_MIN_KERNEL_BYTES = 1 * 1024 * 1024


def _stochastic_depth_kernel(mask_smem, x_ref, r_ref, o_ref):
    # mask_smem: (B,) int32 keep mask (0/1) in SMEM (scalar prefetch).
    # x_ref / r_ref / o_ref: (1, rows, lane_w) lane-dense feature blocks in VMEM.
    keep = mask_smem[pl.program_id(0)] == 1

    @pl.when(keep)
    def _():
        o_ref[...] = x_ref[...] + r_ref[...]

    @pl.when(jnp.logical_not(keep))
    def _():
        o_ref[...] = x_ref[...]


def _sublane_multiple(itemsize):
    # Native sublane packing granularity: 8 for 32-bit, 16 for bf16, 32 for int8.
    return max(8, 8 * (4 // itemsize))


def _pick_lane_width(feat, itemsize):
    # Widest lane width (multiple of 128) dividing feat that still leaves at
    # least one sublane-full tile of rows; else the widest divisor; else None.
    sub = _sublane_multiple(itemsize)
    candidates = [lw for lw in (1024, 512, 256, 128) if feat % lw == 0]
    if not candidates:
        return None
    for lw in candidates:          # ordered wide -> narrow
        if feat // lw >= sub:
            return lw
    return candidates[-1]


def _pick_rows(num_rows, lane_w, itemsize):
    # Sublane-aligned row-block size closest to the byte target. Does NOT need
    # to divide num_rows: the grid uses cdiv and Pallas masks the partial tail.
    sub = _sublane_multiple(itemsize)
    if num_rows <= sub:
        return num_rows            # block dim == full array dim (always legal)
    rows_by_bytes = _TARGET_BLOCK_BYTES // (lane_w * itemsize)
    rows = max(sub, (rows_by_bytes // sub) * sub)
    return min(rows, (num_rows // sub) * sub)


def _jax_reference(x, residual, mask_f32):
    shape = (x.shape[0],) + (1,) * (x.ndim - 1)
    return x + mask_f32.reshape(shape).astype(x.dtype) * residual


def stochastic_depth(x, residual, survival_prob=0.8, training=True, key=None,
                     force_kernel=False, keep_override=None):
    """Returns (out, keep_mask). keep_mask has shape (B,) float32 (0.0 / 1.0)."""
    assert x.shape == residual.shape and x.dtype == residual.dtype
    batch = x.shape[0]
    feat = math.prod(x.shape[1:])
    itemsize = jnp.dtype(x.dtype).itemsize

    if not training:
        # Eval: plain residual add. XLA fuses this at full HBM roofline.
        return x + residual, jnp.ones((batch,), dtype=jnp.float32)

    if keep_override is not None:
        keep = keep_override.astype(jnp.bool_)
    else:
        assert key is not None, "training mode requires a PRNG key"
        keep = jax.random.uniform(key, (batch,), dtype=jnp.float32) < survival_prob
    mask_i32 = keep.astype(jnp.int32)      # SMEM scalar-prefetch operand
    mask_f32 = keep.astype(jnp.float32)    # returned for reference/debug use

    total_bytes = batch * feat * itemsize
    if feat % 128 != 0 or (total_bytes < _MIN_KERNEL_BYTES and not force_kernel):
        # Ragged feature axis or tiny tensor: the fused XLA elementwise is
        # already roofline-bound and avoids pad/slice copies entirely.
        return _jax_reference(x, residual, mask_f32), mask_f32

    lane_w = _pick_lane_width(feat, itemsize)
    num_rows = feat // lane_w
    rows = _pick_rows(num_rows, lane_w, itemsize)

    x3 = x.reshape(batch, num_rows, lane_w)
    r3 = residual.reshape(batch, num_rows, lane_w)

    block = (1, rows, lane_w)
    xo_idx = lambda b, r, mask_ref: (b, r, 0)
    # Dropped samples never read r_ref: route them all to block (0,0,0) so the
    # pipeline sees an unchanged block index and skips the residual DMA.
    r_idx = lambda b, r, mask_ref: (b * mask_ref[b], r * mask_ref[b], 0)

    grid = (batch, pl.cdiv(num_rows, rows))

    out3 = pl.pallas_call(
        _stochastic_depth_kernel,
        out_shape=jax.ShapeDtypeStruct((batch, num_rows, lane_w), x.dtype),
        grid_spec=pltpu.PrefetchScalarGridSpec(
            num_scalar_prefetch=1,          # mask -> SMEM
            grid=grid,
            in_specs=[
                pl.BlockSpec(block, xo_idx),   # x block
                pl.BlockSpec(block, r_idx),    # residual block (DMA-skippable)
            ],
            out_specs=pl.BlockSpec(block, xo_idx),
        ),
        compiler_params=pltpu.CompilerParams(
            dimension_semantics=("parallel", "parallel"),
            vmem_limit_bytes=32 * 1024 * 1024,   # lifts v5e's 16 MiB scoped default
        ),
    )(mask_i32, x3, r3)

    return out3.reshape(x.shape), mask_f32


if __name__ == "__main__":
    key = jax.random.PRNGKey(0)
    kx, kr, kmask = jax.random.split(key, 3)

    B, C, H, W = 2, 4, 16, 16
    x = jax.random.normal(kx, (B, C, H, W), dtype=jnp.float32)
    residual = jax.random.normal(kr, (B, C, H, W), dtype=jnp.float32)

    # 1) Deterministic mask exercising both kernel branches (keep and drop) and
    #    the dropped-sample residual-DMA-skip index path.
    keep = jnp.array([1, 0], dtype=jnp.int32)
    out, mask = stochastic_depth(x, residual, survival_prob=0.8, training=True,
                                 key=kmask, force_kernel=True, keep_override=keep)
    out = jax.block_until_ready(out)
    ref = _jax_reference(x, residual, mask)
    assert jnp.allclose(out, ref, atol=1e-6), "training-mode (explicit mask) mismatch"

    # 2) Random per-sample mask through the kernel path.
    out2, mask2 = stochastic_depth(x, residual, survival_prob=0.8, training=True,
                                   key=kmask, force_kernel=True)
    out2 = jax.block_until_ready(out2)
    ref2 = _jax_reference(x, residual, mask2)
    assert jnp.allclose(out2, ref2, atol=1e-6), "training-mode (random mask) mismatch"

    # 3) Default auto path (tiny tensor -> fused XLA fallback).
    out3, mask3 = stochastic_depth(x, residual, survival_prob=0.8, training=True,
                                   key=kmask)
    out3 = jax.block_until_ready(out3)
    assert jnp.allclose(out3, _jax_reference(x, residual, mask3), atol=1e-6), \
        "fallback-path mismatch"

    # 4) Eval mode: plain residual add.
    out_eval, _ = stochastic_depth(x, residual, survival_prob=0.8, training=False)
    out_eval = jax.block_until_ready(out_eval)
    assert jnp.allclose(out_eval, x + residual, atol=1e-6), "eval-mode mismatch"

    print("KERNEL_OK")
</pallas_src>

<mosaic_0001>
module attributes {stable_mosaic.version = 11 : i64} {
  func.func @_stochastic_depth_kernel(%arg0: i32, %arg1: i32, %arg2: memref<2xi32, #tpu.memory_space<smem>>, %arg3: memref<1x8x128xf32, #tpu.memory_space<vmem>>, %arg4: memref<1x8x128xf32, #tpu.memory_space<vmem>>, %arg5: memref<1x8x128xf32, #tpu.memory_space<vmem>>) attributes {dimension_semantics = [#tpu.dimension_semantics<parallel>, #tpu.dimension_semantics<parallel>], iteration_bounds = array<i64: 2, 1>, scalar_prefetch = 1 : i64, scratch_operands = 0 : i64, tpu.core_type = #tpu.core_type<tc>, window_params = [{transform_indices = @transform_0, window_bounds = array<i64: 1, 8, 128>}, {transform_indices = @transform_1, window_bounds = array<i64: 1, 8, 128>}, {transform_indices = @transform_2, window_bounds = array<i64: 1, 8, 128>}]} {
    %0 = arith.index_cast %arg0 : i32 to index
    %1 = memref.load %arg2[%0] : memref<2xi32, #tpu.memory_space<smem>>
    %c1_i32 = arith.constant 1 : i32
    %2 = arith.cmpi eq, %1, %c1_i32 : i32
    %3 = arith.extui %2 : i1 to i32
    %c0_i32 = arith.constant 0 : i32
    %4 = arith.cmpi ne, %3, %c0_i32 : i32
    scf.if %4 {
      %c0 = arith.constant 0 : index
      %c0_1 = arith.constant 0 : index
      %c0_2 = arith.constant 0 : index
      %8 = vector.load %arg3[%c0, %c0_1, %c0_2] : memref<1x8x128xf32, #tpu.memory_space<vmem>>, vector<1x8x128xf32>
      %c0_3 = arith.constant 0 : index
      %c0_4 = arith.constant 0 : index
      %c0_5 = arith.constant 0 : index
      %9 = vector.load %arg4[%c0_3, %c0_4, %c0_5] : memref<1x8x128xf32, #tpu.memory_space<vmem>>, vector<1x8x128xf32>
      %10 = arith.addf %8, %9 : vector<1x8x128xf32>
      %c0_6 = arith.constant 0 : index
      %c0_7 = arith.constant 0 : index
      %c0_8 = arith.constant 0 : index
      %11 = vector.load %arg5[%c0_6, %c0_7, %c0_8] : memref<1x8x128xf32, #tpu.memory_space<vmem>>, vector<1x8x128xf32>
      tpu.vector_store %arg5[%c0_6, %c0_7, %c0_8], %10 {strides = array<i32>} : memref<1x8x128xf32, #tpu.memory_space<vmem>>, vector<1x8x128xf32>,
    } else {
    }
    %true = arith.constant true
    %5 = arith.xori %2, %true : i1
    %6 = arith.extui %5 : i1 to i32
    %c0_i32_0 = arith.constant 0 : i32
    %7 = arith.cmpi ne, %6, %c0_i32_0 : i32
    scf.if %7 {
      %c0 = arith.constant 0 : index
      %c0_1 = arith.constant 0 : index
      %c0_2 = arith.constant 0 : index
      %8 = vector.load %arg3[%c0, %c0_1, %c0_2] : memref<1x8x128xf32, #tpu.memory_space<vmem>>, vector<1x8x128xf32>
      %c0_3 = arith.constant 0 : index
      %c0_4 = arith.constant 0 : index
      %c0_5 = arith.constant 0 : index
      %9 = vector.load %arg5[%c0_3, %c0_4, %c0_5] : memref<1x8x128xf32, #tpu.memory_space<vmem>>, vector<1x8x128xf32>
      tpu.vector_store %arg5[%c0_3, %c0_4, %c0_5], %8 {strides = array<i32>} : memref<1x8x128xf32, #tpu.memory_space<vmem>>, vector<1x8x128xf32>,
    } else {
    }
    return
  }
  func.func @transform_0(%arg0: i32, %arg1: i32, %arg2: memref<2xi32, #tpu.memory_space<smem>>) -> (i32, i32, i32) {
    %c0_i32 = arith.constant 0 : i32
    %c0_i32_0 = arith.constant 0 : i32
    return %arg0, %arg1, %c0_i32 : i32, i32, i32
  }
  func.func @transform_1(%arg0: i32, %arg1: i32, %arg2: memref<2xi32, #tpu.memory_space<smem>>) -> (i32, i32, i32) {
    %0 = arith.index_cast %arg0 : i32 to index
    %1 = memref.load %arg2[%0] : memref<2xi32, #tpu.memory_space<smem>>
    %2 = arith.muli %arg0, %1 : i32
    %3 = arith.index_cast %arg0 : i32 to index
    %4 = memref.load %arg2[%3] : memref<2xi32, #tpu.memory_space<smem>>
    %5 = arith.muli %arg1, %4 : i32
    %c0_i32 = arith.constant 0 : i32
    %c0_i32_0 = arith.constant 0 : i32
    return %2, %5, %c0_i32 : i32, i32, i32
  }
  func.func @transform_2(%arg0: i32, %arg1: i32, %arg2: memref<2xi32, #tpu.memory_space<smem>>) -> (i32, i32, i32) {
    %c0_i32 = arith.constant 0 : i32
    %c0_i32_0 = arith.constant 0 : i32
    return %arg0, %arg1, %c0_i32 : i32, i32, i32
  }
}

</mosaic_0001>

<bundles_post_ra>
// kernel: tpu_custom_call.1
= control target key start
LH: loop header
LB: loop body
LE: loop exit
PB: predicated region body
PF: predicated region fallthrough
CT: control target
= control target key end

     0   :  { %s677_s15 = smov [#allocation3]   ;;  %s923_s0 = inlined_call_operand.hbm [shape: s32[2], index: 0, kind: input, shape index: {}]   ;;  %s924_s1 = inlined_call_operand.hbm [shape: f32[2,8,128], index: 1, kind: input, shape index: {}]   ;;  %s925_s2 = inlined_call_operand.hbm [shape: f32[2,8,128], index: 2, kind: input, shape index: {}]   ;;  %s926_s3 = inlined_call_operand.hbm [shape: f32[2,8,128], index: 3, kind: output, shape index: {}]  }
   0x1   :  { %930 = sst [smem:[#allocation20_spill]] %s924_s1  ;;  %s9_s14 = sshll.u32 %s923_s0, 4  ;;  %s10_s14 = int_to_ptr.hbm [resolvable:$true] %s9_s14 }
   0x2   :  { %12 = dma.hbm_to_smem %s10_s14, 16, %s677_s15, [#allocation2] }
   0x3   :  { %627 = dma.done.wait [#allocation2], 16 }
   0x4   :  { %628 = vsyncadd [#allocation2], 4294967280 }
   0x5   :  { %15 = sfence }
   0x6   :  { %16 = vsyncpa [#allocation5], 0 }
   0x7   :  { %18 = vsyncpa [#allocation5 + $0x1], 0 }
   0x8   :  { %19 = vsyncpa [#allocation8], 0 }
   0x9   :  { %21 = vsyncpa [#allocation8 + $0x1], 0 }
   0xa   :  { %22 = vsyncpa [#allocation6], 0 }
   0xb   :  { %24 = vsyncpa [#allocation6 + $0x1], 0  ;;  %s701_s16 = smov 0   ;;  %s703_s17 = smov 0  }
   0xc   :  { %s705_s18 = smov 0   ;;  %s707_s19 = smov 0  }
   0xd   :  { %s709_s0 = smov 0   ;;  %s711_s20 = smov 0  }
   0xe   :  { %s713_s21 = smov 0   ;;  %s715_s22 = smov 0  }
   0xf   :  { %s717_s23 = smov 0  }
  0x10 LB: > { %931 = sst [smem:[#allocation16_spill]] %s663_s20  ;;  %s377_s24 = sadd.s32 4294967295, %s675_s23   ;;  %s675_s23 = sphi %s717_s23, %s30_s23   ;;  %s671_s22 = sphi %s715_s22, %s956_s22   ;;  %s667_s21 = sphi %s713_s21, %s955_s21   ;;  %s663_s20 = sphi %s711_s20, %s948_s20   ;;  %s659_s0 = sphi %s709_s0, %s954_s0   ;;  %s655_s19 = sphi %s707_s19, %s953_s19   ;;  %s651_s18 = sphi %s705_s18, %s952_s18   ;;  %s647_s17 = sphi %s703_s17, %s951_s17   ;;  %s643_s16 = sphi %s701_s16, %s950_s16  }
  0x11   : > { %s378_s25 = sadd.s32 4294967294, %s675_s23   ;;  %s42_s26 = sadd.s32 1, %s671_s22 }
  0x12   : > { %s51_s27 = sadd.s32 1, %s663_s20  ;;  %p44_p0 = scmp.ge.s32.totalorder %s42_s26, 2 }
  0x13   : > { %p58_p1 = scmp.ne.s32.totalorder %s663_s20, %s659_s0  ;;  %p59_p2 = scmp.eq.s32.totalorder %s675_s23, 0 }
  0x14   : > { %p64_p3 = scmp.ne.s32.totalorder %s659_s0, %s655_s19  ;;  %s958_s26 = smov (%p44_p0, %s42_s26), 0 }
  0x15   : > { %932 = sst [smem:[#allocation17_spill]] %s958_s26  ;;  %p759_p4 = por %p59_p2, %p58_p1 }
  0x16   : > { %p763_p5 = scmp.eq.s32.totalorder %s377_s24, 0  ;;  %s46_s30 = ssub.s32 %s671_s22, %s958_s26 }
  0x17   : > { %p124_p6 = scmp.eq.s32.totalorder %s377_s24, 1  ;;  %p49_p7 = scmp.eq.s32.totalorder %s46_s30, 0 }
  0x18   : > { %p771_p8 = por %p763_p5, %p64_p3  ;;  %p130_p10 = scmp.eq.s32.totalorder %s378_s25, 1 }
  0x19   : > { %p775_p9 = por %p124_p6, %p58_p1  ;;  %p416_p13 = scmp.lt.s32.totalorder %s675_s23, 2 }
  0x1a   : > { %s780_s6 = scalar_select %p49_p7, %s663_s20, %s51_s27  }
  0x1b   : > { %p782_p11 = por %p130_p10, %p64_p3  ;;  %s150_s8 = sand.u32 1, %s663_s20  }
  0x1c   : > { %937 = sst [smem:[#allocation18_spill]] %s780_s6  ;;  %s381_s9 = sshll.u32 %s150_s8, 3 }
  0x1d   : > { %s938_s7 = scalar_select %p782_p11, 1, 0 }
  0x1e   : > { %s382_s10 = sshll.u32 %s671_s22, 3  ;;  %s940_s1 = sld [smem:[#allocation20_spill]] }
  0x1f   : > { %939 = sst [smem:[#allocation19_spill]] %s938_s7  ;;  %s154_s14 = scalar_lea.vmem [#allocation4], %s381_s9 }
  0x20   : > { %s163_s15 = sshll.u32 %s154_s14, 4  ;;  %p404_p0 = pnand %p416_p13, %p759_p4  ;;  %s164_s15 = int_to_ptr.vmem [resolvable:$true] %s163_s15 }
  0x21   : > { %p385_p1 = scmp.ge.s32.totalorder %s675_s23, 1  ;;  %p191_p3 = scmp.lt.s32.totalorder %s675_s23, 3 }
  0x22   : > { %s151_s25 = scalar_lea.sflag [#allocation5], %s150_s8  ;;  %s74_s30 = sld [smem:[#allocation3 + %s671_s22]] }
  0x23   : > { %p799_p6 = pnand %p385_p1, %p191_p3  ;;  %s77_s9 = sld [smem:[#allocation3 + %s958_s26]] }
  0x24   : > { %s159_s13 = scalar_lea.hbm %s940_s1, %s382_s10  ;;  %p92_p7 = scmp.ne.s32.totalorder %s651_s18, %s647_s17 }
  0x25   : > { %s161_s24 = sshll.u32 %s159_s13, 4  ;;  %p98_p10 = scmp.ne.s32.totalorder %s647_s17, %s643_s16  ;;  %s162_s24 = int_to_ptr.hbm [resolvable:$true] %s161_s24 }
  0x26   : > { %406 = dma.hbm_to_vmem [thread:$0]  (!%p404_p0), %s162_s24, 128, %s164_s15, %s151_s25  }
  0x27   : > { %p811_p12 = por %p92_p7, %p59_p2  ;;  %p817_p4 = por %p98_p10, %p763_p5 }
  0x28   : > { %s75_s16 = smul.u32 %s671_s22, %s74_s30  ;;  %s85_s12 = sadd.s32 1, %s651_s18 }
  0x29   : > { %p825_p0 = pnand %p416_p13, %p811_p12  ;;  %s78_s11 = smul.u32 %s77_s9, %s958_s26 }
  0x2a   : > { %s396_s13 = scalar_select %p811_p12, [#allocation3], [#allocation10] }
  0x2b   : > { %s80_s29 = ssub.s32 %s75_s16, %s78_s11  ;;  %s170_s14 = sand.u32 1, %s651_s18  }
  0x2c   : > { %p83_p2 = scmp.eq.s32.totalorder %s80_s29, 0  ;;  %s960_s13 = smov (!%p416_p13, %s396_s13), [#allocation11] }
  0x2d   : > { %s397_s15 = scalar_select %p811_p12, %s671_s22, 0 }
  0x2e   : > { %s839_s24 = scalar_select %p83_p2, %s651_s18, %s85_s12  }
  0x2f   : > { %s962_s15 = smov (!%p416_p13, %s397_s15), 0  ;;  %s383_s25 = sshll.u32 %s170_s14, 3 }
  0x30   : > { %s175_s1 = sld [smem:[%s960_s13 + %s962_s15]]  ;;  %s174_s30 = scalar_lea.vmem [#allocation7], %s383_s25 }
  0x31   : > { %s186_s9 = sshll.u32 %s174_s30, 4  ;;  %s171_s11 = scalar_lea.sflag [#allocation8], %s170_s14  ;;  %s187_s9 = int_to_ptr.vmem [resolvable:$true] %s186_s9 }
  0x32   : > { %p537_p12 = pneg %p825_p0 }
  0x36   : > { %s176_s6 = smul.u32 %s671_s22, %s175_s1 }
  0x38   : > { %s384_s26 = sshll.u32 %s176_s6, 3  ;;  %s540_s6 = scalar_lea.hbm %s925_s2, 16 }
  0x39   : > { %s182_s16 = scalar_lea.hbm %s925_s2, %s384_s26 }
  0x3a   : > { %s184_s28 = sshll.u32 %s182_s16, 4  ;;  %s185_s28 = int_to_ptr.hbm [resolvable:$true] %s184_s28 }
  0x3b   : > { %s533_s12 = sshra.s32 %s185_s28, 4  ;;  %s534_s12 = int_to_ptr.hbm [resolvable:$true] %s533_s12 }
  0x3c   : > { %s535_s29 = scalar_lea.hbm %s534_s12, 8  ;;  %p541_p3 = scmp.lt.s32.totalorder %s534_s12, %s925_s2 }
  0x3d   : > { %p536_p5 = scmp.ne.s32.totalorder %s534_s12, %s535_s29  ;;  %p542_p7 = scmp.lt.s32.totalorder %s540_s6, %s535_s29 }
  0x3f   : > { %p538_p13 = pnand %p537_p12, %p536_p5  ;;  %p543_p10 = por %p542_p7, %p541_p3 }
  0x41   : > { %p539_p1 = pneg %p538_p13 }
  0x43   : > { %p544_p2 = pnand %p543_p10, %p539_p1 }
  0x45   : > { %547 = shalt.err (!%p544_p2)
}
  0x46   : > { %411 = dma.hbm_to_vmem [thread:$0]  (!%p825_p0), %s185_s28, 128, %s187_s9, %s171_s11  }
  0x47   : > { %195 = sbr.rel (%p799_p6) target bundleno = 122 (0x7a), region = 28  ;;  %s862_s20 = sand.u32 (!%p799_p6), 1, %s659_s0  }
  0x48   : > { %s386_s26 = sshll.u32 (!%p799_p6), %s862_s20, 3  ;;  %s198_s7 = scalar_lea.sflag (!%p799_p6), [#allocation5], %s862_s20 }
  0x49   : > { %s201_s14 = scalar_lea.vmem (!%p799_p6), [#allocation4], %s386_s26 }
  0x4c   : > { %630 = dma.done.wait (%p771_p8), %s198_s7, 128  }
  0x4d   : > { %632 = vsyncadd (%p771_p8), %s198_s7, 4294967168  ;;  %s207_s10 = sand.u32 1, %s647_s17  }
  0x4e   : > { %s387_s30 = sshll.u32 %s207_s10, 3  ;;  %s208_s27 = scalar_lea.sflag [#allocation8], %s207_s10 }
  0x4f   : > { %s211_s9 = scalar_lea.vmem [#allocation7], %s387_s30 }
  0x50   : > { %634 = dma.done.wait (%p817_p4), %s208_s27, 128  }
  0x51   : > { %636 = vsyncadd (%p817_p4), %s208_s27, 4294967168  ;;  %s241_s16 = sld [smem:[#allocation3 + %s667_s21]]  ;;  %s237_s28 = scalar_lea.vmem [#allocation9], %s386_s26 }
  0x57   : > { %p389_p6 = scmp.ne.s32.totalorder %s241_s16, 1 }
  0x59   : > { %245 = sbr.rel (%p389_p6) target bundleno = 98 (0x62), region = 40 }
  0x5e   : > { %v246_v0 = vld [vmem:[%s201_s14] sm:$0xff]  ;;  %v247_v1 = vld [vmem:[%s211_s9] sm:$0xff] }
  0x5f   : > { %v248_v2 = vadd.f32 %v247_v1, %v246_v0 }
  0x61   : > { %249 = vst [vmem:[%s237_s28] sm:$0xff] %v248_v2 }
  0x62 PF: > { %p390_p8 = scmp.eq.s32.totalorder %s241_s16, 1 }
  0x64   : > { %253 = sbr.rel (%p390_p8) target bundleno = 107 (0x6b), region = 44 }
  0x69   : > { %v254_v3 = vld [vmem:[%s201_s14] sm:$0xff] }
  0x6a   : > { %255 = vst [vmem:[%s237_s28] sm:$0xff] %v254_v3 }
  0x6b PF: > { %s392_s4 = sshll.u32 %s667_s21, 3  ;;  %s270_s29 = sshll.u32 %s237_s28, 4  ;;  %s271_s29 = int_to_ptr.vmem [resolvable:$true] %s270_s29 }
  0x6c   : > { %s268_s12 = scalar_lea.hbm %s926_s3, %s392_s4  ;;  %s257_s13 = scalar_lea.sflag [#allocation6], %s862_s20 }
  0x6d   : > { %s272_s1 = sshll.u32 %s268_s12, 4  ;;  %s583_s21 = scalar_lea.hbm %s926_s3, 16  ;;  %s273_s1 = int_to_ptr.hbm [resolvable:$true] %s272_s1 }
  0x6e   : > { %s577_s6 = sshra.s32 %s273_s1, 4  ;;  %s578_s6 = int_to_ptr.hbm [resolvable:$true] %s577_s6 }
  0x6f   : > { %s579_s15 = scalar_lea.hbm %s578_s6, 8  ;;  %p584_p12 = scmp.lt.s32.totalorder %s578_s6, %s926_s3 }
  0x70   : > { %p580_p4 = scmp.ne.s32.totalorder %s578_s6, %s579_s15  ;;  %p585_p13 = scmp.lt.s32.totalorder %s583_s21, %s579_s15 }
  0x72   : > { %p581_p0 = pnand %p580_p4, %p775_p9  ;;  %p586_p1 = por %p585_p13, %p584_p12 }
  0x74   : > { %p582_p5 = pneg %p581_p0 }
  0x76   : > { %p587_p3 = pnand %p586_p1, %p582_p5 }
  0x78   : > { %590 = shalt.err (!%p587_p3)
}
  0x79   : > { %401 = dma.vmem_to_hbm [thread:$0]  (%p775_p9), %s271_s29, 128, %s273_s1, %s257_s13  }
  0x7a PF: > { %s284_s10 = sand.u32 1, %s655_s19   ;;  %p946_p7 = scmp.ge.s32.totalorder %s675_s23, 2 }
  0x7b   : > { %s285_s30 = scalar_lea.sflag [#allocation6], %s284_s10 }
  0x7c   : > { %p413_p10 = pnand %p946_p7, %p782_p11 }
  0x7e   : > { %p414_p2 = pneg %p413_p10 }
  0x80   : > { %638 = dma.done.wait (%p414_p2), %s285_s30, 128  }
  0x81   : > { %640 = vsyncadd (%p414_p2), %s285_s30, 4294967168  ;;  %s30_s23 = sadd.s32 1, %s675_s23   ;;  %s947_s5 = sld [smem:[#allocation16_spill]] }
  0x82   : > { %p27_p6 = scmp.ge.s32.totalorder %s30_s23, 4   ;;  %s948_s20 = sld [smem:[#allocation18_spill]] }
  0x83   : > { %s949_s27 = sld [smem:[#allocation17_spill]]  ;;  %s950_s16 = smov %s647_s17 }
  0x84   : > { %s951_s17 = smov %s651_s18  ;;  %s952_s18 = smov %s839_s24 }
  0x85   : > { %s953_s19 = smov %s659_s0  ;;  %s955_s21 = smov %s671_s22 }
  0x86   :  { %29 = sbr.rel (!%p27_p6) target bundleno = 16 (0x10), region = 94 }
  0x87   : > { %s954_s0 = smov %s947_s5 }
  0x89   : > { %s956_s22 = smov %s949_s27 }
  0x8b   :  { %291 = vsyncpa [#allocation5], 1 }
  0x8c   :  { %293 = vsyncpa [#allocation5 + $0x1], 1 }
  0x8d   :  { %294 = vsyncpa [#allocation8], 1 }
  0x8e   :  { %296 = vsyncpa [#allocation8 + $0x1], 1 }
  0x8f   :  { %297 = vsyncpa [#allocation6], 1 }
  0x90   :  { %299 = vsyncpa [#allocation6 + $0x1], 1 }

</bundles_post_ra>
